<compile_context>
chip_gen: v7x
topology: tpu7x:2x2x1
jax: 0.10.0
libtpu: 0.0.40
codegen_flags: <defaults>
</compile_context>

<pallas_src>
import math

import jax
import jax.numpy as jnp
from jax.experimental import pallas as pl
from jax.experimental.pallas import tpu as pltpu


# ----------------------------- kernel ---------------------------------------

def _unary_op(v):
    # The "operator" parameter of ModelConstEvalPass; instantiated as relu.
    return jnp.maximum(v, 0.0)


def _const_eval_kernel(x_ref, cop_ref, o_ref):
    # cop_ref already holds op(constant) (const-evaluated at module init),
    # so the hot path is just relu(x) + c_op on the VPU.
    o_ref[...] = _unary_op(x_ref[...]) + cop_ref[...]


# ----------------------------- layout planning --------------------------------

_TARGET_BLOCK_BYTES = 2 * 1024 * 1024   # ~2 MiB per block per array


def _round_up(a, b):
    return ((a + b - 1) // b) * b


def _plan_layout(total, itemsize):
    """Return (cols, rows, pad, tile_rows, grid_r) for a lane-dense 2D slab."""
    # Prefer a lane width (multiple of 128) that divides `total` exactly so the
    # x hot path needs NO flat pad and NO final slice.
    cols, pad = None, 0
    for c in (2048, 1024, 512, 256, 128):
        if total % c == 0:
            cols = c
            break
    if cols is None:
        cols = 512
        pad = (-total) % cols
    rows = (total + pad) // cols

    # Row tiling: ~2 MiB blocks.  3 arrays x 2 bufs x 2 MiB = 12 MiB, inside
    # every generation's default scoped VMEM (incl. v5e's 16 MiB, v7x's 32 MiB).
    row_tile_max = max(8, _TARGET_BLOCK_BYTES // (cols * itemsize))
    row_tile_max = _round_up(row_tile_max, 8)

    if rows > row_tile_max:
        tile_rows = row_tile_max
    elif rows >= 16:
        # At least 2 balanced blocks so v7x's second TensorCore gets work.
        tile_rows = _round_up(pl.cdiv(rows, 2), 8)
    else:
        tile_rows = rows            # single block; equals full array dim
    grid_r = pl.cdiv(rows, tile_rows)
    return cols, rows, pad, tile_rows, grid_r


# ----------------------------- forward builder --------------------------------

def _build_forward(shape, dtype, plan):
    cols, rows, pad, tile_rows, grid_r = plan
    total = math.prod(shape)
    itemsize = jnp.dtype(dtype).itemsize
    slab_bytes = rows * cols * itemsize

    def forward(x, c_slab):
        xf = x.reshape(-1)
        if pad:
            # Only taken when prod(shape) is not a multiple of 128.
            xf = jnp.pad(xf, (0, pad))
        x2 = xf.reshape(rows, cols)

        out2 = pl.pallas_call(
            _const_eval_kernel,
            out_shape=jax.ShapeDtypeStruct((rows, cols), dtype),
            grid=(grid_r,),
            in_specs=[
                pl.BlockSpec((tile_rows, cols), lambda i: (i, 0)),
                pl.BlockSpec((tile_rows, cols), lambda i: (i, 0)),
            ],
            out_specs=pl.BlockSpec((tile_rows, cols), lambda i: (i, 0)),
            compiler_params=pltpu.CompilerParams(
                dimension_semantics=("parallel",),
            ),
            cost_estimate=pl.CostEstimate(
                flops=2 * rows * cols,          # max + add per element
                transcendentals=0,
                bytes_accessed=3 * slab_bytes,  # actual post-layout traffic
            ),
        )(x2, c_slab)

        if pad:
            return out2.reshape(-1)[:total].reshape(shape)
        return out2.reshape(shape)

    return jax.jit(forward)


# ----------------------------- module-like port ------------------------------

def make_constant(shape, dtype=jnp.float32, value_range=(-1.0, 1.0)):
    """Mimics TensorUtils.create_torch_constant: deterministic seed = prod(shape)."""
    # TODO(synk): not bit-identical to the torch RNG; only the seeding scheme is kept.
    seed = math.prod(shape)
    key = jax.random.PRNGKey(seed)
    lo, hi = value_range
    c = jax.random.uniform(key, shape, dtype=jnp.float32, minval=lo, maxval=hi)
    return c.astype(dtype)


class ModelConstEvalPass:
    """JAX/Pallas port of the PyTorch ModelConstEvalPass (operator = relu)."""

    def __init__(self, shape, dtype=jnp.float32, value_range=(-1.0, 1.0)):
        self.shape = tuple(shape)
        self.dtype = jnp.dtype(dtype)
        total = math.prod(self.shape)
        self._plan = _plan_layout(total, self.dtype.itemsize)
        cols, rows, pad, _, _ = self._plan

        self.constant = make_constant(self.shape, self.dtype, value_range)

        # Const-eval pass: fold op(constant) AND its slab layout once at init.
        cf = _unary_op(self.constant).reshape(-1)
        if pad:
            cf = jnp.pad(cf, (0, pad))
        self.constant_op_slab = jax.device_put(
            cf.reshape(rows, cols).astype(self.dtype))

        self._forward = _build_forward(self.shape, self.dtype, self._plan)

    def __call__(self, x):
        x = x.astype(self.dtype)
        return self._forward(x, self.constant_op_slab)


# ----------------------------- demo / check ----------------------------------

if __name__ == "__main__":
    shape = (2, 4, 16, 16)  # N, C, H, W

    x = jax.random.uniform(
        jax.random.PRNGKey(0), shape, dtype=jnp.float32, minval=-1.0, maxval=1.0
    )

    model = ModelConstEvalPass(shape)
    out = model(x)
    jax.block_until_ready(out)

    # Pure-JAX reference: op(x) + op(constant).
    ref = jnp.maximum(x, 0.0) + jnp.maximum(model.constant, 0.0)
    assert out.shape == shape
    assert out.dtype == x.dtype
    assert jnp.allclose(out, ref, atol=1e-6), "mismatch vs reference"

    print("KERNEL_OK")
</pallas_src>

<mosaic_0001>
module attributes {stable_mosaic.version = 11 : i64} {
  func.func @_const_eval_kernel(%arg0: i32, %arg1: memref<1x2048xf32, #tpu.memory_space<vmem>>, %arg2: memref<1x2048xf32, #tpu.memory_space<vmem>>, %arg3: memref<1x2048xf32, #tpu.memory_space<vmem>>) attributes {dimension_semantics = [#tpu.dimension_semantics<parallel>], iteration_bounds = array<i64: 1>, scalar_prefetch = 0 : i64, scratch_operands = 0 : i64, tpu.core_type = #tpu.core_type<tc>, window_params = [{transform_indices = @transform_0, window_bounds = array<i64: 1, 2048>}, {transform_indices = @transform_1, window_bounds = array<i64: 1, 2048>}, {transform_indices = @transform_2, window_bounds = array<i64: 1, 2048>}]} {
    %c0 = arith.constant 0 : index
    %c0_0 = arith.constant 0 : index
    %0 = vector.load %arg1[%c0, %c0_0] : memref<1x2048xf32, #tpu.memory_space<vmem>>, vector<1x2048xf32>
    %cst = arith.constant 0.000000e+00 : f32
    %1 = vector.broadcast %cst : f32 to vector<1x2048xf32>
    %2 = arith.maximumf %0, %1 : vector<1x2048xf32>
    %c0_1 = arith.constant 0 : index
    %c0_2 = arith.constant 0 : index
    %3 = vector.load %arg2[%c0_1, %c0_2] : memref<1x2048xf32, #tpu.memory_space<vmem>>, vector<1x2048xf32>
    %4 = arith.addf %2, %3 : vector<1x2048xf32>
    %c0_3 = arith.constant 0 : index
    %c0_4 = arith.constant 0 : index
    %5 = vector.load %arg3[%c0_3, %c0_4] : memref<1x2048xf32, #tpu.memory_space<vmem>>, vector<1x2048xf32>
    tpu.vector_store %arg3[%c0_3, %c0_4], %4 {strides = array<i32>} : memref<1x2048xf32, #tpu.memory_space<vmem>>, vector<1x2048xf32>,
    return
  }
  func.func @transform_0(%arg0: i32) -> (i32, i32) {
    %c0_i32 = arith.constant 0 : i32
    %c0_i32_0 = arith.constant 0 : i32
    return %arg0, %c0_i32 : i32, i32
  }
  func.func @transform_1(%arg0: i32) -> (i32, i32) {
    %c0_i32 = arith.constant 0 : i32
    %c0_i32_0 = arith.constant 0 : i32
    return %arg0, %c0_i32 : i32, i32
  }
  func.func @transform_2(%arg0: i32) -> (i32, i32) {
    %c0_i32 = arith.constant 0 : i32
    %c0_i32_0 = arith.constant 0 : i32
    return %arg0, %c0_i32 : i32, i32
  }
}

</mosaic_0001>

<bundles_post_ra>
// kernel: forward.1
= control target key start
LH: loop header
LB: loop body
LE: loop exit
PB: predicated region body
PF: predicated region fallthrough
CT: control target
= control target key end

     0   :  { %s58_s0 = inlined_call_operand.vmem [shape: f32[1,2048], index: 0, kind: input, shape index: {}]   ;;  %s59_s1 = inlined_call_operand.vmem [shape: f32[1,2048], index: 1, kind: input, shape index: {}]   ;;  %s60_s2 = inlined_call_operand.vmem [shape: f32[1,2048], index: 2, kind: output, shape index: {}]  }
   0x1   :  { %v11_v0 = vld [vmem:[%s58_s0] sm:$0xff]  ;;  %v12_v2 = vld [vmem:[%s58_s0 + $0x8] sm:$0xff] }
   0x2   :  { %v15_v1 = vld [vmem:[%s59_s1] sm:$0xff]  ;;  %v13_v3 = vmax.f32 %v11_v0, 0.0  ;;  %v14_v4 = vmax.f32 %v12_v2, 0.0  ;;  %v16_v5 = vld [vmem:[%s59_s1 + $0x8] sm:$0xff] }
   0x4   :  { %v17_v6 = vadd.f32 %v15_v1, %v13_v3  ;;  %v18_v7 = vadd.f32 %v16_v5, %v14_v4 }
   0x6   :  { %19 = vst [vmem:[%s60_s2] sm:$0xff] %v17_v6  ;;  %20 = vst [vmem:[%s60_s2 + $0x8] sm:$0xff] %v18_v7 }

</bundles_post_ra>
